<compile_context>
chip_gen: v5e
topology: v5e:2x2
jax: 0.10.0
libtpu: 0.0.40
codegen_flags: <defaults>
</compile_context>

<pallas_src>
import math

import jax
import jax.numpy as jnp
from jax.experimental import pallas as pl
from jax.experimental.pallas import tpu as pltpu


_LANE = 128
_TILE_BYTES = 4096                 # one (sublane_pack, 128) tile is 4 KiB for f32/bf16/i8
_MAX_ROW_TILE = 512                # multiple of 8/16/32 -> legal row tile for all dtypes
_SPLIT_THRESHOLD_BYTES = 2 << 20   # only split a 1-block grid when x >= 2 MiB (v7x 2-TC win)


def _build_pe(in_dims: int, max_len: int) -> jnp.ndarray:
    """Deterministic sinusoidal table, identical to the PyTorch __init__ (f32)."""
    assert in_dims % 2 == 0, "in_dims must be even (same constraint as the PyTorch module)"
    position = jnp.arange(max_len, dtype=jnp.float32)[:, None]            # (L, 1)
    div_term = jnp.exp(
        jnp.arange(0, in_dims, 2, dtype=jnp.float32)
        * (-math.log(10000.0) / in_dims)
    )                                                                      # (D/2,)
    pe = jnp.zeros((max_len, in_dims), dtype=jnp.float32)
    pe = pe.at[:, 0::2].set(jnp.sin(position * div_term))
    pe = pe.at[:, 1::2].set(jnp.cos(position * div_term))
    return pe                                                              # (L, D)


def _sublane_pack(dtype) -> int:
    return {4: 8, 2: 16, 1: 32}.get(jnp.dtype(dtype).itemsize, 8)


def _tpu_vmem_capacity() -> int:
    try:
        info = pltpu.get_tpu_info()
        cap = getattr(info, "vmem_capacity_bytes", None)
        if cap:
            return int(cap)
    except Exception:
        pass
    return 64 << 20                 # conservative fallback (v7x per-core VMEM)


def _tiling_params():
    """Generation-aware (target block bytes, scoped VMEM limit, split-for-2-cores)."""
    vmem_cap = _tpu_vmem_capacity()
    if vmem_cap <= (64 << 20):
        # v7x-class: 64 MiB per-core VMEM, ~3.2 TB/s HBM -> bigger blocks amortize
        # the ~0.35 us per-grid-step overhead; keep scoped limit well under 64 MiB.
        return 6 << 20, 44 << 20, True
    # v5e / v6e: 128 MiB VMEM.  ~4 MiB blocks already give ~85% of HBM roofline.
    # Explicit 64 MiB limit (v5e's default scoped limit is only 16 MiB).
    return 4 << 20, 64 << 20, False


def _pos_enc_kernel(x_ref, pe_ref, o_ref):
    # x_ref: (TR, TC), pe_ref: (1, TC) -> sublane-broadcast add on the VPU.
    o_ref[...] = x_ref[...] + pe_ref[...]
    # Dropout(p=0.0) is the identity; nothing further to do.
    # TODO(synk): if dropout p > 0 were required, build the keep-mask in-kernel
    # with pltpu.prng_seed + pltpu.stateful_bernoulli.


def positional_encoding(x: jnp.ndarray, pe_flat: jnp.ndarray, *, donate_x: bool = False) -> jnp.ndarray:
    """x: (B, S, D); pe_flat: (1, max_len*D) already in x.dtype.  Returns x + pe[:S]."""
    B, S, D = x.shape
    F = S * D
    pe_flat = pe_flat.reshape(1, -1)
    PE_F = pe_flat.shape[1]
    assert PE_F >= F, "sequence length exceeds the pe table (max_len)"
    assert pe_flat.dtype == x.dtype, "cache pe in the model dtype at init"

    x2 = x.reshape(B, F)
    pe2 = pe_flat

    target_block_bytes, vmem_limit_bytes, split_single = _tiling_params()
    pack = _sublane_pack(x.dtype)

    # Row tile: full batch if small, else a fixed aligned tile.
    TR = B if B <= _MAX_ROW_TILE else _MAX_ROW_TILE
    row_tiles = -(-TR // pack)                       # padded row-tiles per x/out block

    # ---- Padding-aware column-tile budget -----------------------------------
    # Per 128-lane column tile, the double-buffered working set is
    #   2 x (x block + out block + pe block)
    # where x/out pad TR up to the sublane pack and the (1, TC) pe block always
    # occupies one full 4 KiB tile per 128 lanes, regardless of dtype.
    vmem_budget = max(vmem_limit_bytes - (8 << 20), 8 << 20)    # headroom for scratch
    bytes_per_lane_tile = 2 * (2 * row_tiles + 1) * _TILE_BYTES
    max_tiles_vmem = max(1, vmem_budget // bytes_per_lane_tile)
    max_tiles_block = max(1, target_block_bytes // (row_tiles * _TILE_BYTES))
    max_lane_tiles = int(min(max_tiles_vmem, max_tiles_block))

    f_lane_tiles = -(-F // _LANE)

    if f_lane_tiles <= max_lane_tiles:
        tc_tiles = f_lane_tiles                      # full F in one column block
    else:
        # Prefer the largest lane-tile count <= budget that divides the column
        # extent exactly (no masked / narrow trailing block); fall back to the
        # raw cap if the only divisors are pathologically small.
        tc_tiles = max_lane_tiles
        if F % _LANE == 0:
            for d in range(max_lane_tiles, 0, -1):
                if f_lane_tiles % d == 0:
                    if 2 * d >= max_lane_tiles:
                        tc_tiles = d
                    break

    # On v7x, make sure a single-block grid splits into >= 2 column blocks so
    # both TensorCores get work (gated to multi-core chips and >= 2 MiB inputs).
    n_row_blocks = -(-B // TR)
    x_bytes = B * F * jnp.dtype(x.dtype).itemsize
    if (split_single
            and n_row_blocks * (-(-f_lane_tiles // tc_tiles)) == 1
            and f_lane_tiles >= 2 and F % _LANE == 0
            and x_bytes >= _SPLIT_THRESHOLD_BYTES):
        tc_tiles = -(-f_lane_tiles // 2)

    TC = F if tc_tiles >= f_lane_tiles else tc_tiles * _LANE

    # Keep pe's block shape legal / in-bounds:
    #  * TC == F with F not lane-aligned -> pe block must equal pe's full width.
    #  * an edge column block extending past the cached table -> trim to F.
    if PE_F != F and (TC % _LANE != 0 or pl.cdiv(F, TC) * TC > PE_F):
        pe2 = pe2[:, :F]

    grid = (pl.cdiv(B, TR), pl.cdiv(F, TC))

    out2 = pl.pallas_call(
        _pos_enc_kernel,
        out_shape=jax.ShapeDtypeStruct((B, F), x.dtype),
        grid=grid,
        in_specs=[
            pl.BlockSpec((TR, TC), lambda i, j: (i, j)),   # x tile
            pl.BlockSpec((1, TC), lambda i, j: (0, j)),    # pe tile (shared over batch)
        ],
        out_specs=pl.BlockSpec((TR, TC), lambda i, j: (i, j)),
        compiler_params=pltpu.CompilerParams(
            dimension_semantics=("parallel", "parallel"),
            vmem_limit_bytes=vmem_limit_bytes,
        ),
        # Allocation saver only (caller must actually donate x, e.g. via
        # jax.jit donate_argnums, for the alias to take effect).
        input_output_aliases={0: 0} if donate_x else {},
    )(x2, pe2)

    return out2.reshape(B, S, D)


def make_positional_encoding(in_dims: int, max_len: int = 32, dtype=jnp.float32):
    """Build once at init: pe cached in the model dtype, pre-flattened to (1, L*D).

    Note: like the cached cast, a bf16 model adds a bf16-rounded pe (PyTorch
    promotes to f32 for the add); exact for f32 models.
    """
    pe_flat = _build_pe(in_dims, max_len).astype(dtype).reshape(1, max_len * in_dims)

    def apply(x, *, donate_x: bool = False):
        return positional_encoding(x, pe_flat, donate_x=donate_x)

    return apply


if __name__ == "__main__":
    # Small shapes consistent with the module: batch=2, seq=8, in_dims=32, max_len=32.
    B, S, D, MAX_LEN = 2, 8, 32, 32

    key = jax.random.PRNGKey(0)
    x = jax.random.normal(key, (B, S, D), dtype=jnp.float32)

    apply_pe = make_positional_encoding(D, max_len=MAX_LEN, dtype=x.dtype)
    out = jax.block_until_ready(apply_pe(x))

    pe = _build_pe(D, MAX_LEN)
    ref = x + pe[None, :S, :]
    assert out.shape == (B, S, D)
    assert jnp.allclose(out, ref, atol=1e-6, rtol=1e-6)

    # Second check: S == max_len exercises the full-table (no-slice) path.
    x_full = jax.random.normal(jax.random.PRNGKey(1), (B, MAX_LEN, D), dtype=jnp.float32)
    out_full = jax.block_until_ready(apply_pe(x_full))
    ref_full = x_full + pe[None, :, :]
    assert jnp.allclose(out_full, ref_full, atol=1e-6, rtol=1e-6)

    print("KERNEL_OK")
</pallas_src>

<mosaic_0001>
module attributes {stable_mosaic.version = 11 : i64} {
  func.func @_pos_enc_kernel(%arg0: i32, %arg1: i32, %arg2: memref<2x256xf32, #tpu.memory_space<vmem>>, %arg3: memref<1x256xf32, #tpu.memory_space<vmem>>, %arg4: memref<2x256xf32, #tpu.memory_space<vmem>>) attributes {dimension_semantics = [#tpu.dimension_semantics<parallel>, #tpu.dimension_semantics<parallel>], iteration_bounds = array<i64: 1, 1>, scalar_prefetch = 0 : i64, scratch_operands = 0 : i64, tpu.core_type = #tpu.core_type<tc>, window_params = [{transform_indices = @transform_0, window_bounds = array<i64: 2, 256>}, {transform_indices = @transform_1, window_bounds = array<i64: 1, 256>}, {transform_indices = @transform_2, window_bounds = array<i64: 2, 256>}]} {
    %c0 = arith.constant 0 : index
    %c0_0 = arith.constant 0 : index
    %0 = vector.load %arg2[%c0, %c0_0] : memref<2x256xf32, #tpu.memory_space<vmem>>, vector<2x256xf32>
    %c0_1 = arith.constant 0 : index
    %c0_2 = arith.constant 0 : index
    %1 = vector.load %arg3[%c0_1, %c0_2] : memref<1x256xf32, #tpu.memory_space<vmem>>, vector<1x256xf32>
    %2 = vector.broadcast %1 : vector<1x256xf32> to vector<2x256xf32>
    %3 = arith.addf %0, %2 : vector<2x256xf32>
    %c0_3 = arith.constant 0 : index
    %c0_4 = arith.constant 0 : index
    %4 = vector.load %arg4[%c0_3, %c0_4] : memref<2x256xf32, #tpu.memory_space<vmem>>, vector<2x256xf32>
    tpu.vector_store %arg4[%c0_3, %c0_4], %3 {strides = array<i32>} : memref<2x256xf32, #tpu.memory_space<vmem>>, vector<2x256xf32>,
    return
  }
  func.func @transform_0(%arg0: i32, %arg1: i32) -> (i32, i32) {
    %c0_i32 = arith.constant 0 : i32
    return %arg0, %arg1 : i32, i32
  }
  func.func @transform_1(%arg0: i32, %arg1: i32) -> (i32, i32) {
    %c0_i32 = arith.constant 0 : i32
    %c0_i32_0 = arith.constant 0 : i32
    return %c0_i32, %arg1 : i32, i32
  }
  func.func @transform_2(%arg0: i32, %arg1: i32) -> (i32, i32) {
    %c0_i32 = arith.constant 0 : i32
    return %arg0, %arg1 : i32, i32
  }
}

</mosaic_0001>

<bundles_post_ra>
// kernel: tpu_custom_call.1
= control target key start
LH: loop header
LB: loop body
LE: loop exit
PB: predicated region body
PF: predicated region fallthrough
CT: control target
= control target key end

     0   :  { %7 = vsyncpa [#allocation3], 0  ;;  %s177_s0 = inlined_call_operand.hbm [shape: f32[2,256], index: 0, kind: input, shape index: {}]   ;;  %s178_s1 = inlined_call_operand.hbm [shape: f32[1,1024], index: 1, kind: input, shape index: {}]   ;;  %s179_s2 = inlined_call_operand.hbm [shape: f32[2,256], index: 2, kind: output, shape index: {}]  }
   0x1   :  { %8 = vsyncpa [#allocation6], 0 }
   0x2   :  { %9 = vsyncpa [#allocation4], 0  ;;  %s15_s11 = sshll.u32 %s177_s0, 4  ;;  %s150_s12 = smov [#allocation2]   ;;  %s16_s11 = int_to_ptr.hbm [resolvable:$true] %s15_s11 }
   0x3   :  { %s17_s13 = sshll.u32 %s150_s12, 4  ;;  %s26_s16 = sshll.u32 %s178_s1, 4  ;;  %s18_s13 = int_to_ptr.vmem [resolvable:$true] %s17_s13  ;;  %s27_s16 = int_to_ptr.hbm [resolvable:$true] %s26_s16 }
   0x4   :  { %20 = dma.hbm_to_vmem [thread:$0]  %s16_s11, 64, %s18_s13, [#allocation3]  }
   0x5   :  { %s151_s17 = smov [#allocation5]  }
   0x6   :  { %s28_s18 = sshll.u32 %s151_s17, 4  ;;  %s29_s18 = int_to_ptr.vmem [resolvable:$true] %s28_s18 }
   0x7   :  { %31 = dma.hbm_to_vmem [thread:$0]  %s27_s16, 32, %s29_s18, [#allocation6]  }
   0x8   :  { %144 = dma.done.wait [#allocation3], 64  }
   0x9   :  { %145 = vsyncadd [#allocation3], 4294967232 }
   0xa   :  { %146 = dma.done.wait [#allocation6], 32  }
   0xb   :  { %147 = vsyncadd [#allocation6], 4294967264  ;;  %v41_v0 = vld [vmem:[#allocation5] sm:$0x3]  ;;  %vm46_vm0 = vcmask 1041408   ;;  %s152_s0 = smov [#allocation7]  }
   0xc   :  { %v43_v1 = vperm.slane %v41_v0, 0  ;;  %v44_v2 = vperm.slane %v41_v0, 1  ;;  %v40_v3 = vld [vmem:[#allocation2] sm:$0xf]  ;;  %s56_s19 = sshll.u32 %s152_s0, 4  ;;  %s58_s21 = sshll.u32 %s179_s2, 4  ;;  %s57_s19 = int_to_ptr.vmem [resolvable:$true] %s56_s19  ;;  %s59_s21 = int_to_ptr.hbm [resolvable:$true] %s58_s21 }
   0xe   :  { %v45_v4 = vrot.slane %v44_v2, 6 }
  0x10   :  { %v47_v5 = vsel %vm46_vm0, %v43_v1, %v45_v4 }
  0x11   :  { %v49_v6 = vadd.f32 %v47_v5, %v40_v3 }
  0x13   :  { %50 = vst [vmem:[#allocation7] sm:$0xf] %v49_v6 }
  0x14   :  { %61 = dma.vmem_to_hbm [thread:$0]  %s57_s19, 64, %s59_s21, [#allocation4]  }
  0x15   :  { %148 = dma.done.wait [#allocation4], 64  }
  0x16   :  { %149 = vsyncadd [#allocation4], 4294967232 }
  0x17   :  { %66 = vsyncpa [#allocation3], 1 }
  0x18   :  { %67 = vsyncpa [#allocation6], 1 }
  0x19   :  { %68 = vsyncpa [#allocation4], 1 }

</bundles_post_ra>
